<compile_context>
chip_gen: v6e
topology: v6e:2x2x1
jax: 0.10.0
libtpu: 0.0.40
codegen_flags: <defaults>
</compile_context>

<pallas_src>
import jax
import jax.numpy as jnp
from jax.experimental import pallas as pl
from jax.experimental.pallas import tpu as pltpu

LANES = 128


def _round_up(x, m):
    return ((x + m - 1) // m) * m


def _sublane_multiple(dtype):
    """Minimum second-to-last block dim for this dtype (packed layouts)."""
    itemsize = jnp.dtype(dtype).itemsize
    if itemsize >= 4:
        return 8
    if itemsize == 2:
        return 16
    return 32


def _chip_profile():
    """Return (target_tile_bytes_per_input, vmem_limit_bytes, max_core_splits)."""
    kind = ""
    try:
        dev = jax.devices()[0]
        if dev.platform == "tpu":
            kind = dev.device_kind.lower()
    except Exception:
        pass
    if "v7" in kind or "tpu7" in kind:
        # v7x: 64 MiB VMEM / TC, ~3.2 TB/s HBM / TC, 2 TensorCores per chip.
        return 4 * 1024 * 1024, 40 * 1024 * 1024, 2
    if "v6" in kind or "tpu6" in kind:
        # v6e: 128 MiB VMEM, ~1.4 TB/s HBM, single TensorCore.
        return 8 * 1024 * 1024, 80 * 1024 * 1024, 1
    if "v5" in kind:
        # v5e: ~820 GB/s HBM; keep tiles modest, but set vmem limit explicitly
        # (the scoped default is only 16 MiB).
        return 2 * 1024 * 1024, 32 * 1024 * 1024, 1
    # Unknown chip: conservative.
    return 2 * 1024 * 1024, 32 * 1024 * 1024, 1


def _make_rmse_kernel(tile_rows, tiles_per_split, rows_valid):
    """Kernel accumulating sum((yp - yt)^2) into an (8,128) VMEM accumulator.

    Grid = (split, row_tile): the row-tile axis is a sequential reduction;
    each split writes one (1,128) partial-sum row at its last step.
    """

    def kernel(yp_ref, yt_ref, out_ref, acc_ref):
        p = pl.program_id(0)
        j = pl.program_id(1)

        @pl.when(j == 0)
        def _():
            acc_ref[...] = jnp.zeros_like(acc_ref)

        row_start = (p * tiles_per_split + j) * tile_rows

        d = yp_ref[...].astype(jnp.float32) - yt_ref[...].astype(jnp.float32)

        def accumulate(diff):
            sq = diff * diff
            # (r,128) -> (r/8, 8, 128): whole-vreg groups; axis-0 sum is pure
            # VPU adds (no cross-lane work in the steady-state loop).
            acc_ref[...] += jnp.sum(
                sq.reshape(tile_rows // 8, 8, LANES), axis=0)

        # Fast path: tile fully in range (no masking in the steady state).
        @pl.when(row_start + tile_rows <= rows_valid)
        def _():
            accumulate(d)

        # Boundary / excess tile: zero out-of-range rows BEFORE squaring
        # (edge-block OOB contents are undefined).
        @pl.when(row_start + tile_rows > rows_valid)
        def _():
            row_ids = row_start + jax.lax.broadcasted_iota(
                jnp.int32, (tile_rows, LANES), 0)
            accumulate(jnp.where(row_ids < rows_valid, d, 0.0))

        @pl.when(j == pl.num_programs(1) - 1)
        def _():
            # Single sublane reduce per split; lane reduce + sqrt in wrapper.
            out_ref[...] = jnp.sum(acc_ref[...], axis=0, keepdims=True)

    return kernel


def rmse_loss(y_pred, y_true):
    assert y_pred.shape == y_true.shape, "y_pred / y_true shapes must match"
    n_elems = int(y_pred.size)
    assert n_elems > 0

    target_tile_bytes, vmem_limit, max_splits = _chip_profile()

    sub = max(_sublane_multiple(y_pred.dtype), _sublane_multiple(y_true.dtype))
    itemsize = max(jnp.dtype(y_pred.dtype).itemsize,
                   jnp.dtype(y_true.dtype).itemsize)

    # Flatten; keep native dtype (kernel upcasts). Contiguous reshape is free.
    yp = jnp.ravel(y_pred)
    yt = jnp.ravel(y_true)

    # Minimal padding: only to the (sublane, 128) layout boundary, never to a
    # full compute tile. Zero pads contribute 0; divisor below stays n_elems.
    min_chunk = sub * LANES
    padded = _round_up(n_elems, min_chunk)
    if padded != n_elems:
        yp = jnp.pad(yp, (0, padded - n_elems))
        yt = jnp.pad(yt, (0, padded - n_elems))

    rows = padded // LANES            # multiple of `sub`
    yp2 = yp.reshape(rows, LANES)
    yt2 = yt.reshape(rows, LANES)

    # Dtype-aware tile sizing: constant bytes per tile (so bf16/int8 inputs
    # keep the same per-step HBM traffic / overhead amortization as f32).
    tile_rows = max(sub, (target_tile_bytes // (LANES * itemsize)) // sub * sub)
    tile_rows = min(tile_rows, rows)

    tiles_total = pl.cdiv(rows, tile_rows)
    num_splits = max_splits if tiles_total >= max_splits else 1
    tiles_per_split = pl.cdiv(tiles_total, num_splits)
    has_excess = num_splits * tiles_per_split > tiles_total

    if has_excess:
        # Excess grid step (odd tile count on the 2-way split): clamp its DMA
        # to the last real tile; the kernel masks it entirely (contributes 0).
        def in_map(p, j):
            return (jnp.minimum(p * tiles_per_split + j, tiles_total - 1), 0)
    else:
        def in_map(p, j):
            return (p * tiles_per_split + j, 0)

    kernel = _make_rmse_kernel(tile_rows, tiles_per_split, rows)

    cost = pl.CostEstimate(
        flops=3 * n_elems,
        transcendentals=0,
        bytes_accessed=n_elems * (jnp.dtype(y_pred.dtype).itemsize
                                  + jnp.dtype(y_true.dtype).itemsize)
        + num_splits * LANES * 4,
    )

    partials = pl.pallas_call(
        kernel,
        out_shape=jax.ShapeDtypeStruct((num_splits, LANES), jnp.float32),
        grid_spec=pltpu.PrefetchScalarGridSpec(
            num_scalar_prefetch=0,
            grid=(num_splits, tiles_per_split),
            in_specs=[
                pl.BlockSpec((tile_rows, LANES), in_map),
                pl.BlockSpec((tile_rows, LANES), in_map),
            ],
            out_specs=pl.BlockSpec((1, LANES), lambda p, j: (p, 0)),
            scratch_shapes=[pltpu.VMEM((8, LANES), jnp.float32)],
        ),
        compiler_params=pltpu.CompilerParams(
            dimension_semantics=("parallel", "arbitrary"),
            vmem_limit_bytes=vmem_limit,
        ),
        cost_estimate=cost,
    )(yp2, yt2)

    # Combine per-split / per-lane partials, divide by ORIGINAL count, sqrt.
    return jnp.sqrt(jnp.sum(partials) / jnp.float32(n_elems))


if __name__ == "__main__":
    key = jax.random.PRNGKey(0)
    k1, k2 = jax.random.split(key)
    # Shapes consistent with a typical regression output batch (NCHW-style).
    y_pred = jax.random.normal(k1, (2, 4, 16, 16), dtype=jnp.float32)
    y_true = jax.random.normal(k2, (2, 4, 16, 16), dtype=jnp.float32)

    loss = rmse_loss(y_pred, y_true)
    loss = jax.block_until_ready(loss)

    # Reference check against plain JAX (mirrors the PyTorch formula).
    ref = jnp.sqrt(jnp.mean((y_pred - y_true) ** 2))
    assert jnp.allclose(loss, ref, rtol=1e-5, atol=1e-6), (loss, ref)

    print("KERNEL_OK")
</pallas_src>

<mosaic_0001>
module attributes {stable_mosaic.version = 11 : i64} {
  func.func @kernel(%arg0: i32, %arg1: i32, %arg2: memref<16x128xf32, #tpu.memory_space<vmem>>, %arg3: memref<16x128xf32, #tpu.memory_space<vmem>>, %arg4: memref<1x128xf32, #tpu.memory_space<vmem>>, %arg5: memref<8x128xf32, #tpu.memory_space<vmem>>) attributes {dimension_semantics = [#tpu.dimension_semantics<parallel>, #tpu.dimension_semantics<arbitrary>], iteration_bounds = array<i64: 1, 1>, scalar_prefetch = 0 : i64, scratch_operands = 1 : i64, tpu.core_type = #tpu.core_type<tc>, window_params = [{transform_indices = @transform_0, window_bounds = array<i64: 16, 128>}, {transform_indices = @transform_1, window_bounds = array<i64: 16, 128>}, {transform_indices = @transform_2, window_bounds = array<i64: 1, 128>}]} {
    %c0_i32 = arith.constant 0 : i32
    %0 = arith.cmpi eq, %arg1, %c0_i32 : i32
    %1 = arith.extui %0 : i1 to i32
    %c0_i32_0 = arith.constant 0 : i32
    %2 = arith.cmpi ne, %1, %c0_i32_0 : i32
    scf.if %2 {
      %cst = arith.constant 0.000000e+00 : f32
      %20 = vector.broadcast %cst : f32 to vector<8x128xf32>
      %c0_12 = arith.constant 0 : index
      %c0_13 = arith.constant 0 : index
      %21 = vector.load %arg5[%c0_12, %c0_13] : memref<8x128xf32, #tpu.memory_space<vmem>>, vector<8x128xf32>
      tpu.vector_store %arg5[%c0_12, %c0_13], %20 {strides = array<i32>} : memref<8x128xf32, #tpu.memory_space<vmem>>, vector<8x128xf32>,
    } else {
    }
    %c1_i32 = arith.constant 1 : i32
    %3 = arith.muli %arg0, %c1_i32 : i32
    %4 = arith.addi %3, %arg1 : i32
    %c16_i32 = arith.constant 16 : i32
    %5 = arith.muli %4, %c16_i32 : i32
    %c0 = arith.constant 0 : index
    %c0_1 = arith.constant 0 : index
    %6 = vector.load %arg2[%c0, %c0_1] : memref<16x128xf32, #tpu.memory_space<vmem>>, vector<16x128xf32>
    %c0_2 = arith.constant 0 : index
    %c0_3 = arith.constant 0 : index
    %7 = vector.load %arg3[%c0_2, %c0_3] : memref<16x128xf32, #tpu.memory_space<vmem>>, vector<16x128xf32>
    %8 = arith.subf %6, %7 : vector<16x128xf32>
    %c16_i32_4 = arith.constant 16 : i32
    %9 = arith.addi %5, %c16_i32_4 : i32
    %c16_i32_5 = arith.constant 16 : i32
    %10 = arith.cmpi sle, %9, %c16_i32_5 : i32
    %11 = arith.extui %10 : i1 to i32
    %c0_i32_6 = arith.constant 0 : i32
    %12 = arith.cmpi ne, %11, %c0_i32_6 : i32
    scf.if %12 {
      %20 = arith.mulf %8, %8 : vector<16x128xf32>
      %c0_12 = arith.constant 0 : index
      %c0_13 = arith.constant 0 : index
      %21 = vector.load %arg5[%c0_12, %c0_13] : memref<8x128xf32, #tpu.memory_space<vmem>>, vector<8x128xf32>
      %22 = vector.shape_cast %20 : vector<16x128xf32> to vector<2x8x128xf32>
      %cst = arith.constant dense<0.000000e+00> : vector<8x128xf32>
      %23 = vector.multi_reduction <add>, %22, %cst [0] : vector<2x8x128xf32> to vector<8x128xf32>
      %24 = arith.addf %21, %23 : vector<8x128xf32>
      %c0_14 = arith.constant 0 : index
      %c0_15 = arith.constant 0 : index
      %25 = vector.load %arg5[%c0_14, %c0_15] : memref<8x128xf32, #tpu.memory_space<vmem>>, vector<8x128xf32>
      tpu.vector_store %arg5[%c0_14, %c0_15], %24 {strides = array<i32>} : memref<8x128xf32, #tpu.memory_space<vmem>>, vector<8x128xf32>,
    } else {
    }
    %c16_i32_7 = arith.constant 16 : i32
    %13 = arith.addi %5, %c16_i32_7 : i32
    %c16_i32_8 = arith.constant 16 : i32
    %14 = arith.cmpi sgt, %13, %c16_i32_8 : i32
    %15 = arith.extui %14 : i1 to i32
    %c0_i32_9 = arith.constant 0 : i32
    %16 = arith.cmpi ne, %15, %c0_i32_9 : i32
    scf.if %16 {
      %20 = tpu.iota {dimensions = array<i32: 0>} : vector<16x128xi32>
      %21 = vector.broadcast %5 : i32 to vector<16x128xi32>
      %22 = arith.addi %21, %20 : vector<16x128xi32>
      %c16_i32_12 = arith.constant 16 : i32
      %23 = vector.broadcast %c16_i32_12 : i32 to vector<16x128xi32>
      %24 = arith.cmpi slt, %22, %23 : vector<16x128xi32>
      %cst = arith.constant 0.000000e+00 : f32
      %25 = vector.broadcast %cst : f32 to vector<16x128xf32>
      %26 = arith.select %24, %8, %25 : vector<16x128xi1>, vector<16x128xf32>
      %27 = arith.mulf %26, %26 : vector<16x128xf32>
      %c0_13 = arith.constant 0 : index
      %c0_14 = arith.constant 0 : index
      %28 = vector.load %arg5[%c0_13, %c0_14] : memref<8x128xf32, #tpu.memory_space<vmem>>, vector<8x128xf32>
      %29 = vector.shape_cast %27 : vector<16x128xf32> to vector<2x8x128xf32>
      %cst_15 = arith.constant dense<0.000000e+00> : vector<8x128xf32>
      %30 = vector.multi_reduction <add>, %29, %cst_15 [0] : vector<2x8x128xf32> to vector<8x128xf32>
      %31 = arith.addf %28, %30 : vector<8x128xf32>
      %c0_16 = arith.constant 0 : index
      %c0_17 = arith.constant 0 : index
      %32 = vector.load %arg5[%c0_16, %c0_17] : memref<8x128xf32, #tpu.memory_space<vmem>>, vector<8x128xf32>
      tpu.vector_store %arg5[%c0_16, %c0_17], %31 {strides = array<i32>} : memref<8x128xf32, #tpu.memory_space<vmem>>, vector<8x128xf32>,
    } else {
    }
    %c0_i32_10 = arith.constant 0 : i32
    %17 = arith.cmpi eq, %arg1, %c0_i32_10 : i32
    %18 = arith.extui %17 : i1 to i32
    %c0_i32_11 = arith.constant 0 : i32
    %19 = arith.cmpi ne, %18, %c0_i32_11 : i32
    scf.if %19 {
      %c0_12 = arith.constant 0 : index
      %c0_13 = arith.constant 0 : index
      %20 = vector.load %arg5[%c0_12, %c0_13] : memref<8x128xf32, #tpu.memory_space<vmem>>, vector<8x128xf32>
      %cst = arith.constant dense<0.000000e+00> : vector<128xf32>
      %21 = vector.multi_reduction <add>, %20, %cst [0] : vector<8x128xf32> to vector<128xf32>
      %22 = vector.shape_cast %21 : vector<128xf32> to vector<1x128xf32>
      %c0_14 = arith.constant 0 : index
      %c0_15 = arith.constant 0 : index
      %23 = vector.load %arg4[%c0_14, %c0_15] : memref<1x128xf32, #tpu.memory_space<vmem>>, vector<1x128xf32>
      tpu.vector_store %arg4[%c0_14, %c0_15], %22 {strides = array<i32>} : memref<1x128xf32, #tpu.memory_space<vmem>>, vector<1x128xf32>,
    } else {
    }
    return
  }
  func.func @transform_0(%arg0: i32, %arg1: i32) -> (i32, i32) {
    %c1_i32 = arith.constant 1 : i32
    %0 = arith.muli %arg0, %c1_i32 : i32
    %1 = arith.addi %0, %arg1 : i32
    %c0_i32 = arith.constant 0 : i32
    %c0_i32_0 = arith.constant 0 : i32
    return %1, %c0_i32 : i32, i32
  }
  func.func @transform_1(%arg0: i32, %arg1: i32) -> (i32, i32) {
    %c1_i32 = arith.constant 1 : i32
    %0 = arith.muli %arg0, %c1_i32 : i32
    %1 = arith.addi %0, %arg1 : i32
    %c0_i32 = arith.constant 0 : i32
    %c0_i32_0 = arith.constant 0 : i32
    return %1, %c0_i32 : i32, i32
  }
  func.func @transform_2(%arg0: i32, %arg1: i32) -> (i32, i32) {
    %c0_i32 = arith.constant 0 : i32
    %c0_i32_0 = arith.constant 0 : i32
    return %arg0, %c0_i32 : i32, i32
  }
}

</mosaic_0001>

<bundles_post_ra>
// kernel: tpu_custom_call.1
= control target key start
LH: loop header
LB: loop body
LE: loop exit
PB: predicated region body
PF: predicated region fallthrough
CT: control target
= control target key end

     0   :  { %7 = vsyncpa [#allocation4], 0  ;;  %s223_s0 = inlined_call_operand.hbm [shape: f32[16,128], index: 0, kind: input, shape index: {}]   ;;  %s224_s1 = inlined_call_operand.hbm [shape: f32[16,128], index: 1, kind: input, shape index: {}]   ;;  %s225_s2 = inlined_call_operand.hbm [shape: f32[1,128], index: 2, kind: output, shape index: {}]  }
   0x1   :  { %8 = vsyncpa [#allocation7], 0 }
   0x2   :  { %9 = vsyncpa [#allocation5], 0  ;;  %s194_s9 = smov [#allocation3]  }
   0x3   :  { %s19_s10 = sshll.u32 %s194_s9, 4  ;;  %s20_s10 = int_to_ptr.vmem [resolvable:$true] %s19_s10 }
   0x4   :  { %s136_s11 = scalar_lea.vmem %s20_s10, 256  ;;  %p141_p1 = scmp.lt.s32.totalorder %s20_s10, %s20_s10 }
   0x5   :  { %p137_p0 = scmp.ne.s32.totalorder %s20_s10, %s136_s11  ;;  %p142_p2 = scmp.lt.s32.totalorder %s136_s11, %s136_s11 }
   0x7   :  { %p143_p3 = por %p142_p2, %p141_p1 }
   0x9   :  { %p144_p4 = pnand %p143_p3, %p137_p0 }
   0xb   :  { %147 = shalt.err (!%p144_p4)
}
   0xc   :  { %s195_s12 = smov 128   ;;  %s196_s13 = smov 8  }
   0xd   :  { %25 = dma.hbm_to_vmem [thread:$0]  %s223_s0, 256, %s20_s10, [#allocation4], %s195_s12, %s195_s12, %s196_s13  }
   0xe   :  { %s197_s16 = smov [#allocation6]  }
   0xf   :  { %s35_s17 = sshll.u32 %s197_s16, 4  ;;  %s36_s17 = int_to_ptr.vmem [resolvable:$true] %s35_s17 }
  0x10   :  { %s156_s18 = scalar_lea.vmem %s36_s17, 256  ;;  %p161_p6 = scmp.lt.s32.totalorder %s36_s17, %s36_s17 }
  0x11   :  { %p157_p5 = scmp.ne.s32.totalorder %s36_s17, %s156_s18  ;;  %p162_p7 = scmp.lt.s32.totalorder %s156_s18, %s156_s18 }
  0x13   :  { %p163_p8 = por %p162_p7, %p161_p6 }
  0x15   :  { %p164_p9 = pnand %p163_p8, %p157_p5 }
  0x17   :  { %167 = shalt.err (!%p164_p9)
}
  0x18   :  { %41 = dma.hbm_to_vmem [thread:$0]  %s224_s1, 256, %s36_s17, [#allocation7], %s195_s12, %s195_s12, %s196_s13  }
  0x19   :  { %188 = dma.done.wait [#allocation4], 256  }
  0x1a   :  { %189 = vsyncadd [#allocation4], 4294967040 }
  0x1b   :  { %190 = dma.done.wait [#allocation7], 256  }
  0x1c   :  { %191 = vsyncadd [#allocation7], 4294967040  ;;  %v59_v0 = vld [vmem:[#allocation3] sm:$0xff]  ;;  %v60_v1 = vld [vmem:[#allocation3 + $0x8] sm:$0xff]  ;;  %s198_s0 = smov [#allocation8]  }
  0x1d   :  { %v61_v2 = vld [vmem:[#allocation6] sm:$0xff]  ;;  %v62_v3 = vld [vmem:[#allocation6 + $0x8] sm:$0xff]  ;;  %s113_s21 = sshll.u32 %s198_s0, 4  ;;  %s114_s21 = int_to_ptr.vmem [resolvable:$true] %s113_s21 }
  0x1e   :  { %v63_v4 = vsub.f32 %v59_v0, %v61_v2  ;;  %v64_v5 = vsub.f32 %v60_v1, %v62_v3  ;;  %s168_s1 = scalar_lea.vmem %s114_s21, 16  ;;  %s172_s22 = scalar_lea.vmem %s114_s21, 32 }
  0x1f   :  { %p169_p10 = scmp.ne.s32.totalorder %s114_s21, %s168_s1  ;;  %p173_p11 = scmp.lt.s32.totalorder %s114_s21, %s114_s21 }
  0x20   :  { %v70_v6 = vmul.f32 %v63_v4, %v63_v4  ;;  %v71_v7 = vmul.f32 %v64_v5, %v64_v5  ;;  %p174_p12 = scmp.lt.s32.totalorder %s172_s22, %s168_s1 }
  0x22   :  { %v73_v8 = vadd.f32 %v71_v7, %v70_v6  ;;  %p175_p13 = por %p174_p12, %p173_p11 }
  0x24   :  { %v100_v9 = vrot.slane %v73_v8, 4  ;;  %p176_p0 = pnand %p175_p13, %p169_p10 }
  0x26   :  { %v101_v10 = vadd.f32 %v100_v9, %v73_v8 }
  0x28   :  { %v102_v11 = vrot.slane %v101_v10, 2 }
  0x2a   :  { %v103_v12 = vadd.f32 %v102_v11, %v101_v10 }
  0x2c   :  { %v104_v13 = vrot.slane %v103_v12, 1 }
  0x2e   :  { %v105_v14 = vadd.f32 %v104_v13, %v103_v12 }
  0x30   :  { %106 = vst [vmem:[#allocation8] sm:$0x1] %v105_v14 }
  0x31   :  { %179 = shalt.err (!%p176_p0)
}
  0x32   :  { %116 = dma.vmem_to_hbm [thread:$0]  %s114_s21, 16, %s225_s2, [#allocation5]  }
  0x33   :  { %192 = dma.done.wait [#allocation5], 16  }
  0x34   :  { %193 = vsyncadd [#allocation5], 4294967280 }
  0x35   :  { %120 = vsyncpa [#allocation4], 1 }
  0x36   :  { %121 = vsyncpa [#allocation7], 1 }
  0x37   :  { %122 = vsyncpa [#allocation5], 1 }

</bundles_post_ra>
